<compile_context>
chip_gen: v7x
topology: tpu7x:2x2x1
jax: 0.10.0
libtpu: 0.0.40
codegen_flags: <defaults>
</compile_context>

<pallas_src>
import math

import jax
import jax.numpy as jnp
from jax.experimental import pallas as pl
from jax.experimental.pallas import tpu as pltpu

_VMEM_BUDGET = 32 * 1024 * 1024  # target working set; vmem_limit set with headroom


def _round_up(x, m):
    return ((x + m - 1) // m) * m


def _make_kernel(g):
    def kernel(d_ref, ct_ref, w1e_ref, b1n_ref, red_ref, b2_ref, y_ref):
        # d_ref  : (tr, g)     delta_t, g original rows packed per block row
        # ct_ref : (tr, g*H)   hidden state, g original rows packed along lanes
        # w1e_ref: (g, g*H)    kron(I_g, -linear.weight^T)   (resident)
        # b1n_ref: (1, g*H)    -linear.bias tiled g times    (resident)
        # red_ref: (g*H, g)    kron(I_g, pred.weight^T)      (resident)
        # b2_ref : (1,)        pred bias (SMEM scalar)
        # y_ref  : (tr, g)
        d = d_ref[...].astype(jnp.float32)
        ct = ct_ref[...].astype(jnp.float32)

        if g > 1:
            # z[r, c*H+j] = -w1[j] * d[r, c]: segment expansion fused with the
            # gate multiply on the otherwise-idle MXU.
            z = jnp.dot(d, w1e_ref[...],
                        preferred_element_type=jnp.float32,
                        precision=jax.lax.Precision.HIGHEST)
        else:
            z = d * w1e_ref[...]          # (tr,1)*(1,H) broadcast on the VPU

        # gamma = exp(-relu(w1*d + b1)) with pre-negated params (no extra negate)
        gamma = jnp.exp(jnp.minimum(z + b1n_ref[...], 0.0))
        h = ct * gamma

        # per-row H->1 projection as a block-diagonal reduction on the MXU
        y = jnp.dot(h, red_ref[...],
                    preferred_element_type=jnp.float32,
                    precision=jax.lax.Precision.HIGHEST) + b2_ref[0]
        y_ref[...] = y.astype(y_ref.dtype)

    return kernel


def uni_pred_ct(delta_t, ct, w1, b1, w2, b2):
    """Forward pass of Uni_Pred_CT.

    delta_t: (..., 1), ct: (..., H)  ->  y: (..., 1)
    w1: (H, 1), b1: (H,)   -- nn.Linear(1, H) parameters
    w2: (1, H), b2: (1,)   -- nn.Linear(H, 1) parameters
    """
    *lead, H = ct.shape
    assert delta_t.shape == tuple(lead) + (1,)
    N = math.prod(lead) if lead else 1

    # Group g original rows per kernel row so the minor dim g*H is a multiple
    # of 128 -> fully lane-dense blocks, no HBM transpose/copy, contiguous DMA.
    g0 = 128 // math.gcd(H, 128)
    g = g0 if (g0 > 1 and N % g0 == 0) else 1
    Ng, gH = N // g, g * H

    # --- free, contiguous reshapes (no HBM copies) ---
    dg = delta_t.reshape(Ng, g)
    ctg = ct.reshape(Ng, gH)

    # --- parameter prep (tiny) ---
    f32 = jnp.float32
    w1_row = jnp.asarray(w1, f32).reshape(1, H)
    b1_row = jnp.asarray(b1, f32).reshape(1, H)
    w2_col = jnp.asarray(w2, f32).reshape(H, 1)
    eye_g = jnp.eye(g, dtype=f32)
    w1e = jnp.kron(eye_g, -w1_row)                    # (g, gH)  expand + (-w1)*d
    b1n = jnp.tile(-b1_row, (1, g))                   # (1, gH)
    red = jnp.kron(eye_g, w2_col)                     # (gH, g)  block-diag(w2)
    b2s = jnp.asarray(b2, f32).reshape(1)

    # --- row-tile selection: big blocks, >= 2 (even) grid steps for megacore ---
    lanes = _round_up(gH, 128)
    # per row: ct (2 bufs) + ~3 f32 intermediates, plus delta/y (2 bufs each,
    # lane-padded to 128)
    bytes_per_row = (2 + 3) * lanes * 4 + (2 + 2) * 128 * 4
    tr = max(8, ((_VMEM_BUDGET // bytes_per_row) // 8) * 8)
    if Ng < 16:
        tr = Ng                                        # single tiny block (full extent)
    elif Ng <= tr:
        tr = _round_up(pl.cdiv(Ng, 2), 8)              # >= 2 steps so both v7x cores work
    else:
        steps = pl.cdiv(Ng, tr)
        if steps % 2:
            tr = max(8, _round_up(pl.cdiv(Ng, steps + 1), 8))  # even step count
    grid = (pl.cdiv(Ng, tr),)

    y = pl.pallas_call(
        _make_kernel(g),
        out_shape=jax.ShapeDtypeStruct((Ng, g), ct.dtype),
        grid_spec=pltpu.PrefetchScalarGridSpec(
            num_scalar_prefetch=0,
            grid=grid,
            in_specs=[
                pl.BlockSpec((tr, g), lambda i: (i, 0)),            # delta_t
                pl.BlockSpec((tr, gH), lambda i: (i, 0)),           # ct (row-major, contiguous)
                pl.BlockSpec((g, gH), lambda i: (0, 0)),            # kron(I, -w1)  (resident)
                pl.BlockSpec((1, gH), lambda i: (0, 0)),            # -b1 tiled     (resident)
                pl.BlockSpec((gH, g), lambda i: (0, 0)),            # kron(I, w2)   (resident)
                pl.BlockSpec(memory_space=pltpu.MemorySpace.SMEM),  # b2 scalar
            ],
            out_specs=pl.BlockSpec((tr, g), lambda i: (i, 0)),
        ),
        compiler_params=pltpu.CompilerParams(
            dimension_semantics=("parallel",),
            vmem_limit_bytes=48 * 1024 * 1024,
        ),
    )(dg, ctg, w1e, b1n, red, b2s)

    return y.reshape(*lead, 1)


def reference(delta_t, ct, w1, b1, w2, b2):
    # Plain-JAX mirror of the PyTorch math (same H->1 pred_layer interpretation);
    # kept matmul-free so it is exact f32.
    gamma = jnp.exp(-jnp.maximum(delta_t * w1.reshape(1, -1) + b1.reshape(1, -1), 0.0))
    h = ct * gamma
    return jnp.sum(h * w2.reshape(1, -1), axis=-1, keepdims=True) + b2.reshape(1, -1)


def _check(batch, seq, hid_dim, key):
    ks = jax.random.split(key, 6)
    delta_t = jax.random.uniform(ks[0], (batch, seq, 1), jnp.float32) * 5.0
    ct = jax.random.normal(ks[1], (batch, seq, hid_dim), jnp.float32)
    w1 = jax.random.normal(ks[2], (hid_dim, 1), jnp.float32) * 0.5    # linear.weight
    b1 = jax.random.normal(ks[3], (hid_dim,), jnp.float32) * 0.1      # linear.bias
    w2 = jax.random.normal(ks[4], (1, hid_dim), jnp.float32) * 0.5    # pred_layer.weight
    b2 = jax.random.normal(ks[5], (1,), jnp.float32) * 0.1            # pred_layer.bias

    y = jax.block_until_ready(uni_pred_ct(delta_t, ct, w1, b1, w2, b2))
    assert y.shape == (batch, seq, 1)

    n = batch * seq
    y_ref = reference(delta_t.reshape(n, 1), ct.reshape(n, hid_dim),
                      w1, b1, w2, b2).reshape(batch, seq, 1)
    assert jnp.allclose(y, y_ref, atol=1e-3, rtol=1e-3), (
        f"mismatch vs reference for shape ({batch},{seq},{hid_dim})")


if __name__ == "__main__":
    # primary small config (grouped path: H=32 -> g=4, single tiny block)
    _check(batch=2, seq=8, hid_dim=32, key=jax.random.PRNGKey(0))
    # multi-block grouped path with a partial final block and an even grid
    _check(batch=4, seq=600, hid_dim=32, key=jax.random.PRNGKey(1))
    # g == 1 path (hid_dim is the module default 128, already lane-dense)
    _check(batch=2, seq=96, hid_dim=128, key=jax.random.PRNGKey(2))

    print("KERNEL_OK")
</pallas_src>

<mosaic_0001>
module attributes {stable_mosaic.version = 11 : i64} {
  func.func @kernel(%arg0: i32, %arg1: memref<4x4xf32, #tpu.memory_space<vmem>>, %arg2: memref<4x128xf32, #tpu.memory_space<vmem>>, %arg3: memref<4x128xf32, #tpu.memory_space<vmem>>, %arg4: memref<1x128xf32, #tpu.memory_space<vmem>>, %arg5: memref<128x4xf32, #tpu.memory_space<vmem>>, %arg6: memref<1xf32, #tpu.memory_space<smem>>, %arg7: memref<4x4xf32, #tpu.memory_space<vmem>>) attributes {dimension_semantics = [#tpu.dimension_semantics<parallel>], iteration_bounds = array<i64: 1>, scalar_prefetch = 0 : i64, scratch_operands = 0 : i64, tpu.core_type = #tpu.core_type<tc>, window_params = [{transform_indices = @transform_0, window_bounds = array<i64: 4, 4>}, {transform_indices = @transform_1, window_bounds = array<i64: 4, 128>}, {pipeline_mode = #tpu.pipeline_mode<synchronous>, transform_indices = @transform_2, window_bounds = array<i64: 4, 128>}, {pipeline_mode = #tpu.pipeline_mode<synchronous>, transform_indices = @transform_3, window_bounds = array<i64: 1, 128>}, {pipeline_mode = #tpu.pipeline_mode<synchronous>, transform_indices = @transform_4, window_bounds = array<i64: 128, 4>}, {transform_indices = @transform_5, window_bounds = array<i64: 1>}, {transform_indices = @transform_6, window_bounds = array<i64: 4, 4>}]} {
    %c0 = arith.constant 0 : index
    %c0_0 = arith.constant 0 : index
    %0 = vector.load %arg1[%c0, %c0_0] : memref<4x4xf32, #tpu.memory_space<vmem>>, vector<4x4xf32>
    %c0_1 = arith.constant 0 : index
    %c0_2 = arith.constant 0 : index
    %1 = vector.load %arg2[%c0_1, %c0_2] : memref<4x128xf32, #tpu.memory_space<vmem>>, vector<4x128xf32>
    %c0_3 = arith.constant 0 : index
    %c0_4 = arith.constant 0 : index
    %2 = vector.load %arg3[%c0_3, %c0_4] : memref<4x128xf32, #tpu.memory_space<vmem>>, vector<4x128xf32>
    %cst = arith.constant dense<0.000000e+00> : vector<4x128xf32>
    %3 = tpu.matmul %0, %2, %cst {dimension_numbers = #tpu.dot_dimension_numbers<[1], [0], [0], [1], [0, 0, 1, 1], [], []>, precision = #tpu.contract_precision<fp32>} : vector<4x4xf32>, vector<4x128xf32>, vector<4x128xf32> -> vector<4x128xf32>
    %c0_5 = arith.constant 0 : index
    %c0_6 = arith.constant 0 : index
    %4 = vector.load %arg4[%c0_5, %c0_6] : memref<1x128xf32, #tpu.memory_space<vmem>>, vector<1x128xf32>
    %5 = vector.broadcast %4 : vector<1x128xf32> to vector<4x128xf32>
    %6 = arith.addf %3, %5 : vector<4x128xf32>
    %cst_7 = arith.constant 0.000000e+00 : f32
    %7 = vector.broadcast %cst_7 : f32 to vector<4x128xf32>
    %8 = arith.minimumf %6, %7 : vector<4x128xf32>
    %9 = math.exp %8 : vector<4x128xf32>
    %10 = arith.mulf %1, %9 : vector<4x128xf32>
    %c0_8 = arith.constant 0 : index
    %c0_9 = arith.constant 0 : index
    %11 = vector.load %arg5[%c0_8, %c0_9] : memref<128x4xf32, #tpu.memory_space<vmem>>, vector<128x4xf32>
    %cst_10 = arith.constant dense<0.000000e+00> : vector<4x4xf32>
    %12 = tpu.matmul %10, %11, %cst_10 {dimension_numbers = #tpu.dot_dimension_numbers<[1], [0], [0], [1], [0, 0, 1, 1], [], []>, precision = #tpu.contract_precision<fp32>} : vector<4x128xf32>, vector<128x4xf32>, vector<4x4xf32> -> vector<4x4xf32>
    %c0_11 = arith.constant 0 : index
    %13 = memref.load %arg6[%c0_11] : memref<1xf32, #tpu.memory_space<smem>>
    %14 = vector.broadcast %13 : f32 to vector<4x4xf32>
    %15 = arith.addf %12, %14 : vector<4x4xf32>
    %c0_12 = arith.constant 0 : index
    %c0_13 = arith.constant 0 : index
    %16 = vector.load %arg7[%c0_12, %c0_13] : memref<4x4xf32, #tpu.memory_space<vmem>>, vector<4x4xf32>
    tpu.vector_store %arg7[%c0_12, %c0_13], %15 {strides = array<i32>} : memref<4x4xf32, #tpu.memory_space<vmem>>, vector<4x4xf32>,
    return
  }
  func.func @transform_0(%arg0: i32) -> (i32, i32) {
    %c0_i32 = arith.constant 0 : i32
    %c0_i32_0 = arith.constant 0 : i32
    return %arg0, %c0_i32 : i32, i32
  }
  func.func @transform_1(%arg0: i32) -> (i32, i32) {
    %c0_i32 = arith.constant 0 : i32
    %c0_i32_0 = arith.constant 0 : i32
    return %arg0, %c0_i32 : i32, i32
  }
  func.func @transform_2(%arg0: i32) -> (i32, i32) {
    %c0_i32 = arith.constant 0 : i32
    %c0_i32_0 = arith.constant 0 : i32
    %c0_i32_1 = arith.constant 0 : i32
    return %c0_i32, %c0_i32_0 : i32, i32
  }
  func.func @transform_3(%arg0: i32) -> (i32, i32) {
    %c0_i32 = arith.constant 0 : i32
    %c0_i32_0 = arith.constant 0 : i32
    %c0_i32_1 = arith.constant 0 : i32
    return %c0_i32, %c0_i32_0 : i32, i32
  }
  func.func @transform_4(%arg0: i32) -> (i32, i32) {
    %c0_i32 = arith.constant 0 : i32
    %c0_i32_0 = arith.constant 0 : i32
    %c0_i32_1 = arith.constant 0 : i32
    return %c0_i32, %c0_i32_0 : i32, i32
  }
  func.func @transform_5(%arg0: i32) -> i32 {
    %c0_i32 = arith.constant 0 : i32
    %c0_i32_0 = arith.constant 0 : i32
    return %c0_i32 : i32
  }
  func.func @transform_6(%arg0: i32) -> (i32, i32) {
    %c0_i32 = arith.constant 0 : i32
    %c0_i32_0 = arith.constant 0 : i32
    return %arg0, %c0_i32 : i32, i32
  }
}

</mosaic_0001>

<bundles_post_ra>
// kernel: tpu_custom_call.1
= control target key start
LH: loop header
LB: loop body
LE: loop exit
PB: predicated region body
PF: predicated region fallthrough
CT: control target
= control target key end

     0   :  { %vm39_vm0 = vcmask 1043456   ;;  %vm35_vm1 = vcmask 31744   ;;  %v1717_v1 = vmov 0.0   ;;  %vm1718_vm2 = vmmov 0   ;;  %s2103_s0 = inlined_call_operand.vmem [shape: f32[4,4], index: 0, kind: input, shape index: {}]   ;;  %s2104_s1 = inlined_call_operand.vmem [shape: f32[4,128], index: 1, kind: input, shape index: {}]   ;;  %s2105_s2 = inlined_call_operand.vmem [shape: f32[4,128], index: 2, kind: input, shape index: {}]   ;;  %s2106_s3 = inlined_call_operand.vmem [shape: f32[1,128], index: 3, kind: input, shape index: {}]   ;;  %s2107_s4 = inlined_call_operand.vmem [shape: f32[128,4], index: 4, kind: input, shape index: {}]   ;;  %s2108_s5 = inlined_call_operand.<no memory space> [shape: f32[1], index: 5, kind: input, shape index: {}]   ;;  %s2109_s6 = inlined_call_operand.hbm [shape: f32[4,4], index: 6, kind: output, shape index: {}]  }
   0x1   :  { %v27_v0 = vld [vmem:[%s2105_s2] sm:$0xf]  ;;  %1298 = vmatprep.subr.mxu0 %v1717_v1  ;;  %1300 = vmatprep.mubr.msk.f32.mxu0 %vm1718_vm2, %v1717_v1 }
   0x2   :  { %v41_v2 = vsel %vm39_vm0, %v27_v0, 0  ;;  %v25_v3 = vld [vmem:[%s2103_s0] sm:$0xf] }
   0x3   :  { %12 = vsyncpa [#allocation4], 0  ;;  %v44_v4 = vand.u32 4294901760, %v41_v2  ;;  %v37_v5 = vsel %vm35_vm1, %v25_v3, 0  ;;  %1283 = vmatprep.subr.mxu1 %v1717_v1  ;;  %1285 = vmatprep.mubr.msk.f32.mxu1 %vm1718_vm2, %v1717_v1  ;;  %v1719_v15 = vmov 0.0|0.0   ;;  %v493_v16 = vld [vmem:[%s2107_s4] sm:$0xff] }
   0x4   :  { %v109_v6 = vand.u32 4294901760, %v37_v5  ;;  %v494_v17 = vld [vmem:[%s2107_s4 + $0x8] sm:$0xff]  ;;  %v512_v18 = vand.u32 4294901760, %v493_v16  ;;  %v495_v21 = vld [vmem:[%s2107_s4 + $0x10] sm:$0xff]  ;;  %v496_v22 = vld [vmem:[%s2107_s4 + $0x18] sm:$0xff]  ;;  %s1720_s8 = smov [#allocation3]  }
   0x5   :  { %v121_v7 = vsub.f32 %v41_v2, %v44_v4  ;;  %1299 = vmatpush3.msra.mxu0 %v44_v4  ;;  %1284 = vmatpush3.msra.mxu1 %v44_v4  ;;  %v515_v19 = vand.u32 4294901760, %v494_v17  ;;  %v518_v25 = vand.u32 4294901760, %v495_v21  ;;  %v521_v26 = vand.u32 4294901760, %v496_v22  ;;  %v497_v28 = vld [vmem:[%s2107_s4 + $0x20] sm:$0xff]  ;;  %v498_v29 = vld [vmem:[%s2107_s4 + $0x28] sm:$0xff]  ;;  %v499_v33 = vld [vmem:[%s2107_s4 + $0x30] sm:$0xff] }
   0x6   :  { %v110_v8 = vsub.f32 %v37_v5, %v109_v6  ;;  %1288 = vmatprep.subr.mxu1 %v1717_v1  ;;  %1303 = vmatprep.subr.mxu0 %v1717_v1  ;;  %v1800_v23 = vsub.f32 %v493_v16, %v512_v18  ;;  %v524_v30 = vand.u32 4294901760, %v497_v28  ;;  %v527_v31 = vand.u32 4294901760, %v498_v29  ;;  %v500_v34 = vld [vmem:[%s2107_s4 + $0x38] sm:$0xff]  ;;  %v501_v38 = vld [vmem:[%s2107_s4 + $0x40] sm:$0xff]  ;;  %v502_v39 = vld [vmem:[%s2107_s4 + $0x48] sm:$0xff]  ;;  %s1160_s9 = sshll.u32 %s1720_s8, 4  ;;  %s1161_s9 = int_to_ptr.vmem [resolvable:$true] %s1160_s9 }
   0x7   :  { %v122_v9 = vand.u32 4294901760, %v121_v7  ;;  %v1792_v20 = vpack.c.bf16 %v515_v19, %v512_v18  ;;  %v1802_v24 = vsub.f32 %v494_v17, %v515_v19  ;;  %v1808_v27 = vpack.c.bf16 %v521_v26, %v518_v25  ;;  %v503_v46 = vld [vmem:[%s2107_s4 + $0x50] sm:$0xff]  ;;  %v504_v47 = vld [vmem:[%s2107_s4 + $0x58] sm:$0xff]  ;;  %v505_v48 = vld [vmem:[%s2107_s4 + $0x60] sm:$0xff]  ;;  %s1693_s10 = scalar_lea.vmem %s1161_s9, 64  ;;  %p1698_p1 = scmp.lt.s32.totalorder %s1161_s9, %s1161_s9 }
   0x8   :  { %v111_v10 = vand.u32 4294901760, %v110_v8  ;;  %v1820_v32 = vpack.c.bf16 %v527_v31, %v524_v30  ;;  %v530_v35 = vand.u32 4294901760, %v499_v33  ;;  %v533_v36 = vand.u32 4294901760, %v500_v34  ;;  %v506_v53 = vld [vmem:[%s2107_s4 + $0x68] sm:$0xff]  ;;  %v507_v54 = vld [vmem:[%s2107_s4 + $0x70] sm:$0xff]  ;;  %v508_v55 = vld [vmem:[%s2107_s4 + $0x78] sm:$0xff]  ;;  %p1694_p0 = scmp.ne.s32.totalorder %s1161_s9, %s1693_s10  ;;  %p1699_p2 = scmp.lt.s32.totalorder %s1693_s10, %s1693_s10 }
   0x9   :  { %v123_v11 = vsub.f32 %v121_v7, %v122_v9  ;;  %v536_v40 = vand.u32 4294901760, %v501_v38  ;;  %v539_v41 = vand.u32 4294901760, %v502_v39  ;;  %v1842_v42 = vsub.f32 %v495_v21, %v518_v25 }
   0xa   :  { %1301 = vmatmul.mubr.f32.vlgmr.msra.gmra.mrb[0].mxu0 %v111_v10  ;;  %v112_v12 = vsub.f32 %v110_v8, %v111_v10  ;;  %v1832_v37 = vpack.c.bf16 %v533_v36, %v530_v35  ;;  %v1844_v43 = vsub.f32 %v496_v22, %v521_v26  ;;  %v1846_v44 = vsub.f32 %v497_v28, %v524_v30  ;;  %p1700_p3 = por %p1699_p2, %p1698_p1 }
   0xb   :  { %v124_v13 = vand.u32 4294901760, %v123_v11  ;;  %1304 = vmatpush3.msra.mxu0 %v122_v9  ;;  %1305 = vmatprep.mubr.msk.f32.mxu0 %vm1718_vm2, %v1717_v1  ;;  %v1848_v45 = vsub.f32 %v498_v29, %v527_v31  ;;  %v1860_v49 = vsub.f32 %v499_v33, %v530_v35  ;;  %v1862_v50 = vsub.f32 %v500_v34, %v533_v36 }
   0xc   :  { %v113_v14 = vand.u32 4294901760, %v112_v12  ;;  %1308 = vmatprep.subr.mxu0 %v1717_v1  ;;  %v1864_v51 = vpack.c.bf16 %v539_v41, %v536_v40  ;;  %v1866_v52 = vsub.f32 %v501_v38, %v536_v40  ;;  %v1878_v56 = vsub.f32 %v502_v39, %v539_v41  ;;  %p1701_p4 = pnand %p1700_p3, %p1694_p0 }
   0xd   :  { %v542_v57 = vand.u32 4294901760, %v503_v46  ;;  %v545_v58 = vand.u32 4294901760, %v504_v47  ;;  %v548_v59 = vand.u32 4294901760, %v505_v48  ;;  %v551_v60 = vand.u32 4294901760, %v506_v53 }
   0xe   :  { %1286 = vmatmul.mubr.f32.vlgmr.msra.gmra.mrb[0].mxu1 %v113_v14  ;;  %v554_v61 = vand.u32 4294901760, %v507_v54  ;;  %v557_v2 = vand.u32 4294901760, %v508_v55  ;;  %v605_v9 = vand.u32 4294901760, %v1800_v23  ;;  %v612_v10 = vand.u32 4294901760, %v1802_v24 }
   0xf   :  { %1289 = vmatpush3.msra.mxu1 %v124_v13  ;;  %1290 = vmatprep.mubr.msk.f32.mxu1 %vm1718_vm2, %v1717_v1  ;;  %v1883_v62 = vpack.c.bf16 %v545_v58, %v542_v57  ;;  %v1885_v63 = vsub.f32 %v503_v46, %v542_v57  ;;  %v1887_v0 = vsub.f32 %v504_v47, %v545_v58  ;;  %v619_v17 = vand.u32 4294901760, %v1842_v42 }
  0x10   :  { %1293 = vmatprep.subr.mxu1 %v1717_v1  ;;  %v1890_v3 = vsub.f32 %v505_v48, %v548_v59  ;;  %v1894_v5 = vsub.f32 %v507_v54, %v554_v61  ;;  %v1916_v11 = vpack.c.bf16 %v612_v10, %v605_v9  ;;  %v606_v12 = vsub.f32 %v1800_v23, %v605_v9 }
  0x11   :  { %v613_v13 = vsub.f32 %v1802_v24, %v612_v10  ;;  %v626_v18 = vand.u32 4294901760, %v1844_v43  ;;  %v620_v22 = vsub.f32 %v1842_v42, %v619_v17  ;;  %v633_v29 = vand.u32 4294901760, %v1846_v44 }
  0x12   :  { %1306 = vmatmul.mubr.f32.vlgmr.msra.gmra.mrb[0].mxu0 %v109_v6  ;;  %v607_v14 = vand.u32 4294901760, %v606_v12  ;;  %v640_v30 = vand.u32 4294901760, %v1848_v45  ;;  %v647_v39 = vand.u32 4294901760, %v1860_v49  ;;  %v654_v40 = vand.u32 4294901760, %v1862_v50 }
  0x13   :  { %1309 = vmatpush3.msra.mxu0 %v44_v4  ;;  %1310 = vmatprep.mubr.msk.f32.mxu0 %vm1718_vm2, %v1717_v1  ;;  %v1892_v4 = vsub.f32 %v506_v53, %v551_v60  ;;  %v614_v16 = vand.u32 4294901760, %v613_v13  ;;  %v1924_v21 = vpack.c.bf16 %v626_v18, %v619_v17  ;;  %v627_v25 = vsub.f32 %v1844_v43, %v626_v18 }
  0x14   :  { %1523 = vmatprep.subr.bf16.mxu0 %v1719_v15  ;;  %v621_v26 = vand.u32 4294901760, %v620_v22  ;;  %v1932_v33 = vpack.c.bf16 %v640_v30, %v633_v29  ;;  %v634_v34 = vsub.f32 %v1846_v44, %v633_v29  ;;  %v641_v35 = vsub.f32 %v1848_v45, %v640_v30 }
  0x15   :  { %v1922_v19 = vpack.c.bf16 %v614_v16, %v607_v14  ;;  %v628_v28 = vand.u32 4294901760, %v627_v25  ;;  %v1940_v46 = vpack.c.bf16 %v654_v40, %v647_v39  ;;  %v648_v47 = vsub.f32 %v1860_v49, %v647_v39 }
  0x16   :  { %1291 = vmatmul.mubr.f32.vlgmr.msra.gmra.mrb[0].mxu1 %v109_v6  ;;  %v635_v36 = vand.u32 4294901760, %v634_v34  ;;  %v642_v38 = vand.u32 4294901760, %v641_v35  ;;  %v655_v48 = vsub.f32 %v1862_v50, %v654_v40  ;;  %v668_v57 = vand.u32 4294901760, %v1878_v56 }
  0x17   :  { %1294 = vmatpush3.msra.mxu1 %v121_v7  ;;  %1295 = vmatprep.mubr.msk.f32.mxu1 %vm1718_vm2, %v1717_v1  ;;  %v1900_v7 = vpack.c.bf16 %v551_v60, %v548_v59  ;;  %v1930_v31 = vpack.c.bf16 %v628_v28, %v621_v26  ;;  %v649_v53 = vand.u32 4294901760, %v648_v47  ;;  %v675_v10 = vand.u32 4294901760, %v1885_v63 }
  0x18   :  { %1595 = vmatprep.subr.bf16.mxu1 %v1719_v15  ;;  %v1938_v41 = vpack.c.bf16 %v642_v38, %v635_v36  ;;  %v656_v54 = vand.u32 4294901760, %v655_v48  ;;  %v682_v12 = vand.u32 4294901760, %v1887_v0  ;;  %v689_v25 = vand.u32 4294901760, %v1890_v3 }
  0x19   :  { %v676_v16 = vsub.f32 %v1885_v63, %v675_v10  ;;  %v696_v26 = vand.u32 4294901760, %v1892_v4  ;;  %v703_v38 = vand.u32 4294901760, %v1894_v5  ;;  %vm1152_vm3 = vcmask 27648  }
  0x1a   :  { %1311 = vmatmul.mubr.f32.vlgmr.msra.gmra.mrb[0].mxu0 %v109_v6  ;;  %v1896_v6 = vsub.f32 %v508_v55, %v557_v2  ;;  %v661_v55 = vand.u32 4294901760, %v1866_v52  ;;  %v1946_v58 = vpack.c.bf16 %v656_v54, %v649_v53  ;;  %v1956_v14 = vpack.c.bf16 %v682_v12, %v675_v10 }
  0x1b   :  { %1345 = vmatprep.mubr.msk.f32.mxu0 %vm1718_vm2, %v1717_v1  ;;  %1525 = vmatpush3.bf16.msra.mxu0 %v1792_v20  ;;  %v683_v17 = vsub.f32 %v1887_v0, %v682_v12  ;;  %v677_v18 = vand.u32 4294901760, %v676_v16  ;;  %v1964_v29 = vpack.c.bf16 %v696_v26, %v689_v25  ;;  %v690_v30 = vsub.f32 %v1890_v3, %v689_v25  ;;  %v1168_v25 = vld [vmem:[%s2106_s3] ss:$0 sm:$0xff] }
  0x1c   :  { %1526 = vmatprep.subr.bf16.mxu0 %v1719_v15  ;;  %v1948_v59 = vpack.c.bf16 %v668_v57, %v661_v55  ;;  %v662_v60 = vsub.f32 %v1866_v52, %v661_v55  ;;  %v697_v34 = vsub.f32 %v1892_v4, %v696_v26  ;;  %v710_v39 = vand.u32 4294901760, %v1896_v6 }
  0x1d   :  { %v684_v22 = vand.u32 4294901760, %v683_v17  ;;  %v691_v35 = vand.u32 4294901760, %v690_v30  ;;  %v704_v48 = vsub.f32 %v1894_v5, %v703_v38  ;;  %v1584_v10 = vpack.c.bf16 %v1878_v56, %v1866_v52 }
  0x1e   :  { %1296 = vmatmul.mubr.f32.vlgmr.msra.gmra.mrb[0].mxu1 %v110_v8  ;;  %v1906_v8 = vpack.c.bf16 %v557_v2, %v554_v61  ;;  %v669_v61 = vsub.f32 %v1878_v56, %v668_v57  ;;  %v663_v2 = vand.u32 4294901760, %v662_v60  ;;  %v698_v36 = vand.u32 4294901760, %v697_v34 }
  0x1f   :  { %1450 = vmatprep.mubr.msk.f32.mxu1 %vm1718_vm2, %v1717_v1  ;;  %1597 = vmatpush3.bf16.msra.mxu1 %v1792_v20  ;;  %v1962_v28 = vpack.c.bf16 %v684_v22, %v677_v18  ;;  %v1641_v47 = vpack.c.bf16 %v710_v39, %v703_v38  ;;  %v711_v53 = vsub.f32 %v1896_v6, %v710_v39  ;;  %v705_v54 = vand.u32 4294901760, %v704_v48  ;;  %v26_v39 = vld [vmem:[%s2104_s1] sm:$0xf] }
  0x20   :  { %1598 = vmatprep.subr.bf16.mxu1 %v1719_v15  ;;  %1528 = vmatpush3.bf16.msra.mxu0 %v1808_v27  ;;  %v670_v9 = vand.u32 4294901760, %v669_v61  ;;  %v1566_v40 = vpack.c.bf16 %v698_v36, %v691_v35  ;;  %v1572_v60 = vpack.c.bf16 %v1802_v24, %v1800_v23  ;;  %v1575_v61 = vpack.c.bf16 %v1844_v43, %v1842_v42 }
  0x21   :  { %1529 = vmatprep.subr.bf16.mxu0 %v1719_v15  ;;  %v712_v55 = vand.u32 4294901760, %v711_v53  ;;  %v1587_v12 = vpack.c.bf16 %v1887_v0, %v1885_v63  ;;  %v1590_v16 = vpack.c.bf16 %v1892_v4, %v1890_v3  ;;  %v1593_v17 = vpack.c.bf16 %v1896_v6, %v1894_v5 }
  0x22   :  { %v1954_v13 = vpack.c.bf16 %v670_v9, %v663_v2  ;;  %v1578_v2 = vpack.c.bf16 %v1848_v45, %v1846_v44  ;;  %v1581_v9 = vpack.c.bf16 %v1862_v50, %v1860_v49  ;;  %v510_v23 = vstv %s2108_s5 }
  0x23   :  { %1600 = vmatpush3.bf16.msra.mxu1 %v1808_v27  ;;  %v1569_v57 = vpack.c.bf16 %v712_v55, %v705_v54 }
  0x24   :  { %1601 = vmatprep.subr.bf16.mxu1 %v1719_v15  ;;  %1531 = vmatpush3.bf16.msra.mxu0 %v1820_v32 }
  0x25   :  { %1532 = vmatprep.subr.bf16.mxu0 %v1719_v15 }
  0x27   :  { %1603 = vmatpush3.bf16.msra.mxu1 %v1820_v32 }
  0x28   :  { %1604 = vmatprep.subr.bf16.mxu1 %v1719_v15  ;;  %1534 = vmatpush3.bf16.msra.mxu0 %v1832_v37 }
  0x29   :  { %1535 = vmatprep.subr.bf16.mxu0 %v1719_v15 }
  0x2b   :  { %1606 = vmatpush3.bf16.msra.mxu1 %v1832_v37 }
  0x2c   :  { %1607 = vmatprep.subr.bf16.mxu1 %v1719_v15  ;;  %1537 = vmatpush3.bf16.msra.mxu0 %v1864_v51 }
  0x2d   :  { %1538 = vmatprep.subr.bf16.mxu0 %v1719_v15 }
  0x2f   :  { %1609 = vmatpush3.bf16.msra.mxu1 %v1864_v51 }
  0x30   :  { %1610 = vmatprep.subr.bf16.mxu1 %v1719_v15  ;;  %1540 = vmatpush3.bf16.msra.mxu0 %v1883_v62 }
  0x31   :  { %1541 = vmatprep.subr.bf16.mxu0 %v1719_v15 }
  0x33   :  { %1612 = vmatpush3.bf16.msra.mxu1 %v1883_v62 }
  0x34   :  { %1613 = vmatprep.subr.bf16.mxu1 %v1719_v15  ;;  %1543 = vmatpush3.bf16.msra.mxu0 %v1900_v7 }
  0x35   :  { %1544 = vmatprep.subr.bf16.mxu0 %v1719_v15 }
  0x37   :  { %1615 = vmatpush3.bf16.msra.mxu1 %v1900_v7 }
  0x38   :  { %1616 = vmatprep.subr.bf16.mxu1 %v1719_v15  ;;  %1546 = vmatpush3.bf16.msra.mxu0 %v1906_v8 }
  0x39   :  { %1547 = vmatprep.subr.bf16.mxu0 %v1719_v15 }
  0x3b   :  { %1618 = vmatpush3.bf16.msra.mxu1 %v1906_v8 }
  0x3c   :  { %1619 = vmatprep.subr.bf16.mxu1 %v1719_v15 }
  0xed   :  { %v485_v18 = vpop.f32.mrb[0].mxu0 }
  0xee   :  { %v1312_v22 = vpop.f32.mrb[1].mxu0 }
  0xf1   :  { %v265_v26 = vpop.f32.mrb[0].mxu1 }
  0xf2   :  { %v1667_v30 = vadd.f32 %v1168_v25, %v265_v26  ;;  %v1297_v34 = vpop.f32.mrb[1].mxu1 }
  0xf4   :  { %v1668_v35 = vadd.f32 %v1667_v30, %v485_v18 }
  0xf6   :  { %v489_v36 = vmin.f32 %v1668_v35, 0.0 }
  0xf8   :  { %v490_v38 = vmul.f32 1.442695, %v489_v36 }
  0xfa   :  { %1691 = vpow2.f32 %v490_v38 }
 0x104   :  { %v1692_v48 = vpop.eup %1691 }
 0x105   :  { %v492_v53 = vmul.f32 %v1692_v48, %v26_v39 }
 0x107   :  { %v1994_v54 = vand.u32 4294901760, %v492_v53 }
 0x109   :  { %v1997_v55 = vsub.f32 %v492_v53, %v1994_v54 }
 0x10b   :  { %v594_v22 = vand.u32 4294901760, %v1997_v55 }
 0x10d   :  { %1451 = vmatmul.mubr.f32.vlgmr.msra.gmra.mrb[2].mxu1 %v594_v22  ;;  %v595_v25 = vsub.f32 %v1997_v55, %v594_v22 }
 0x10e   :  { %1621 = vmatpush3.bf16.msra.mxu1 %v1916_v11  ;;  %1485 = vmatprep.mubr.msk.f32.mxu1 %vm1718_vm2, %v1717_v1 }
 0x10f   :  { %1622 = vmatprep.subr.bf16.mxu1 %v1719_v15  ;;  %v596_v18 = vand.u32 4294901760, %v595_v25 }
 0x111   :  { %1346 = vmatmul.mubr.f32.vlgmr.msra.gmra.mrb[2].mxu0 %v596_v18 }
 0x112   :  { %1549 = vmatpush3.bf16.msra.mxu0 %v1922_v19  ;;  %1624 = vmatpush3.bf16.msra.mxu1 %v1924_v21 }
 0x113   :  { %1550 = vmatprep.subr.bf16.mxu0 %v1719_v15  ;;  %1625 = vmatprep.subr.bf16.mxu1 %v1719_v15 }
 0x114   :  { %1380 = vmatprep.mubr.msk.f32.mxu0 %vm1718_vm2, %v1717_v1 }
 0x116   :  { %1552 = vmatpush3.bf16.msra.mxu0 %v1930_v31  ;;  %1627 = vmatpush3.bf16.msra.mxu1 %v1932_v33 }
 0x117   :  { %1553 = vmatprep.subr.bf16.mxu0 %v1719_v15  ;;  %1628 = vmatprep.subr.bf16.mxu1 %v1719_v15 }
 0x11a   :  { %1555 = vmatpush3.bf16.msra.mxu0 %v1938_v41  ;;  %1630 = vmatpush3.bf16.msra.mxu1 %v1940_v46 }
 0x11b   :  { %1556 = vmatprep.subr.bf16.mxu0 %v1719_v15  ;;  %1631 = vmatprep.subr.bf16.mxu1 %v1719_v15 }
 0x11e   :  { %1558 = vmatpush3.bf16.msra.mxu0 %v1946_v58  ;;  %1633 = vmatpush3.bf16.msra.mxu1 %v1948_v59 }
 0x11f   :  { %1559 = vmatprep.subr.bf16.mxu0 %v1719_v15  ;;  %1634 = vmatprep.subr.bf16.mxu1 %v1719_v15 }
 0x122   :  { %1561 = vmatpush3.bf16.msra.mxu0 %v1954_v13  ;;  %1636 = vmatpush3.bf16.msra.mxu1 %v1956_v14 }
 0x123   :  { %1562 = vmatprep.subr.bf16.mxu0 %v1719_v15  ;;  %1637 = vmatprep.subr.bf16.mxu1 %v1719_v15 }
 0x126   :  { %1564 = vmatpush3.bf16.msra.mxu0 %v1962_v28  ;;  %1639 = vmatpush3.bf16.msra.mxu1 %v1964_v29 }
 0x127   :  { %1565 = vmatprep.subr.bf16.mxu0 %v1719_v15  ;;  %1640 = vmatprep.subr.bf16.mxu1 %v1719_v15 }
 0x12a   :  { %1567 = vmatpush3.bf16.msra.mxu0 %v1566_v40  ;;  %1642 = vmatpush3.bf16.msra.mxu1 %v1641_v47 }
 0x12b   :  { %1568 = vmatprep.subr.bf16.mxu0 %v1719_v15  ;;  %1643 = vmatprep.subr.bf16.mxu1 %v1719_v15 }
 0x12d   :  { %1486 = vmatmul.mubr.f32.vlgmr.msra.gmra.mrb[2].mxu1 %v1994_v54 }
 0x12e   :  { %1570 = vmatpush3.bf16.msra.mxu0 %v1569_v57  ;;  %1645 = vmatpush3.bf16.msra.mxu1 %v1792_v20 }
 0x12f   :  { %1571 = vmatprep.subr.bf16.mxu0 %v1719_v15  ;;  %1646 = vmatprep.subr.bf16.mxu1 %v1719_v15 }
 0x130   :  { %1520 = vmatprep.mubr.msk.f32.mxu1 %vm1718_vm2, %v1717_v1 }
 0x131   :  { %1381 = vmatmul.mubr.f32.vlgmr.msra.gmra.mrb[2].mxu0 %v1994_v54 }
 0x132   :  { %1573 = vmatpush3.bf16.msra.mxu0 %v1572_v60  ;;  %1648 = vmatpush3.bf16.msra.mxu1 %v1808_v27 }
 0x133   :  { %1574 = vmatprep.subr.bf16.mxu0 %v1719_v15  ;;  %1649 = vmatprep.subr.bf16.mxu1 %v1719_v15 }
 0x134   :  { %1415 = vmatprep.mubr.msk.f32.mxu0 %vm1718_vm2, %v1717_v1 }
 0x136   :  { %1576 = vmatpush3.bf16.msra.mxu0 %v1575_v61  ;;  %1651 = vmatpush3.bf16.msra.mxu1 %v1820_v32 }
 0x137   :  { %1577 = vmatprep.subr.bf16.mxu0 %v1719_v15  ;;  %1652 = vmatprep.subr.bf16.mxu1 %v1719_v15 }
 0x13a   :  { %1579 = vmatpush3.bf16.msra.mxu0 %v1578_v2  ;;  %1654 = vmatpush3.bf16.msra.mxu1 %v1832_v37 }
 0x13b   :  { %1580 = vmatprep.subr.bf16.mxu0 %v1719_v15  ;;  %1655 = vmatprep.subr.bf16.mxu1 %v1719_v15 }
 0x13e   :  { %1582 = vmatpush3.bf16.msra.mxu0 %v1581_v9  ;;  %1657 = vmatpush3.bf16.msra.mxu1 %v1864_v51 }
 0x13f   :  { %1583 = vmatprep.subr.bf16.mxu0 %v1719_v15  ;;  %1658 = vmatprep.subr.bf16.mxu1 %v1719_v15 }
 0x142   :  { %1585 = vmatpush3.bf16.msra.mxu0 %v1584_v10  ;;  %1660 = vmatpush3.bf16.msra.mxu1 %v1883_v62 }
 0x143   :  { %1586 = vmatprep.subr.bf16.mxu0 %v1719_v15  ;;  %1661 = vmatprep.subr.bf16.mxu1 %v1719_v15 }
 0x146   :  { %1588 = vmatpush3.bf16.msra.mxu0 %v1587_v12  ;;  %1663 = vmatpush3.bf16.msra.mxu1 %v1900_v7 }
 0x147   :  { %1589 = vmatprep.subr.bf16.mxu0 %v1719_v15  ;;  %1664 = vmatprep.subr.bf16.mxu1 %v1719_v15 }
 0x14a   :  { %1591 = vmatpush3.bf16.msra.mxu0 %v1590_v16  ;;  %1666 = vmatpush3.bf16.msra.mxu1 %v1906_v8 }
 0x14b   :  { %1592 = vmatprep.subr.bf16.mxu0 %v1719_v15 }
 0x14d   :  { %1521 = vmatmul.mubr.f32.vlgmr.msra.gmra.mrb[2].mxu1 %v1994_v54 }
 0x14e   :  { %1594 = vmatpush3.bf16.msra.mxu0 %v1593_v17 }
 0x151   :  { %1416 = vmatmul.mubr.f32.vlgmr.msra.gmra.mrb[2].mxu0 %v1997_v55 }
 0x220   :  { %v1148_v1 = vpop.f32.mrb[2].mxu1 }
 0x221   :  { %v1522_v20 = vpop.f32.mrb[3].mxu1 }
 0x224   :  { %v853_v24 = vpop.f32.mrb[2].mxu0 }
 0x225   :  { %v1669_v27 = vadd.f32 %v853_v24, %v510_v23  ;;  %v1417_v32 = vpop.f32.mrb[3].mxu0 }
 0x227   :  { %v1670_v15 = vadd.f32 %v1669_v27, %v1148_v1 }
 0x229   :  { %1153 = vst.msk [vmem:[#allocation3] sm:$0xf] %vm1152_vm3, %v1670_v15 }
 0x22a   :  { %1704 = shalt.err (!%p1701_p4)
}
 0x22b   :  { %s1705_s5 = scalar_lea.hbm %s2109_s6, 64 }
 0x22c   :  { %p1706_p5 = scmp.ne.s32.totalorder %s2109_s6, %s1705_s5  ;;  %p1709_p6 = scmp.lt.u32.totalorder %s1705_s5, %s2109_s6 }
 0x22e   :  { %p1711_p7 = pnand %p1709_p6, %p1706_p5 }
 0x230   :  { %1714 = shalt.err (!%p1711_p7)
}
 0x231   :  { %1163 = dma.vmem_to_hbm [thread:$0]  %s1161_s9, 64, %s2109_s6, [#allocation4]  }
 0x232   :  { %1715 = dma.done.wait [#allocation4], 64  }
 0x233   :  { %1716 = vsyncadd [#allocation4], 4294967232 }
 0x234   :  { %1167 = vsyncpa [#allocation4], 1 }

</bundles_post_ra>
